<compile_context>
chip_gen: v5e
topology: v5e:2x2
jax: 0.10.0
libtpu: 0.0.40
codegen_flags: <defaults>
</compile_context>

<pallas_src>
import jax
import jax.numpy as jnp
from jax.experimental import pallas as pl
from jax.experimental.pallas import tpu as pltpu


def _num_grid_steps(batch):
    """2 grid steps on chips with 2 TensorCores sharing the grid, else 1."""
    try:
        kind = jax.devices()[0].device_kind.lower()
    except Exception:  # no device info -> safe default
        kind = ""
    megacore = any(tag in kind for tag in ("v4", "v5p", "v7"))
    return 2 if (megacore and batch >= 2) else 1


def _make_residual_block_kernel(W, C_pad, N):
    # 3x3 tap offsets (oy, ox) in the row-major (dy, dx) order used to flatten
    # the weights: tap t = dy*3 + dx, weight column index = t*C_pad + ci.
    offsets = [(dy - 1, dx - 1) for dy in range(3) for dx in range(3)]

    def kernel(x_ref, w1_ref, b1_ref, w2_ref, b2_ref, mask_ref, o_ref):
        # x_ref   : (1, C_pad, N)   one block; channels on sublanes, pixels on lanes
        # w*_ref  : (C_pad, 9*C_pad) conv weights in matmul layout
        # b*_ref  : (C_pad, 1)       biases
        # mask_ref: (9*C_pad, N)     precomputed per-tap boundary masks (f32 0/1)
        # o_ref   : (1, C_pad, N)
        x = x_ref[0]  # (C_pad, N), f32

        def conv3x3(act, w_ref, b_ref):
            # Build the (9*C_pad, N) im2col RHS in vregs: chunk t holds `act`
            # shifted by tap t, zeroed outside the image via the hoisted mask.
            chunks = []
            for t, (oy, ox) in enumerate(offsets):
                if oy == 0 and ox == 0:
                    chunks.append(act)
                else:
                    k = oy * W + ox  # source pixel index = m + k (within image)
                    shifted = pltpu.roll(act, shift=(-k) % N, axis=1)
                    chunks.append(shifted * mask_ref[t * C_pad:(t + 1) * C_pad, :])
            rhs = jnp.concatenate(chunks, axis=0)  # (9*C_pad, N)
            # Single fused MXU matmul per conv: (C_pad, 9*C_pad) @ (9*C_pad, N).
            return (
                jnp.dot(w_ref[...], rhs, preferred_element_type=jnp.float32)
                + b_ref[...]
            )

        h1 = conv3x3(jnp.maximum(x, 0.0), w1_ref, b1_ref)
        h2 = conv3x3(jnp.maximum(h1, 0.0), w2_ref, b2_ref)
        o_ref[0] = (x + h2).astype(o_ref.dtype)

    return kernel


def residual_block(x_nchw, w1, b1, w2, b2):
    """x_nchw: (B, C, H, W); w*: (C, C, 3, 3) OIHW; b*: (C,). Returns (B, C, H, W)."""
    B, C, H, W = x_nchw.shape
    HW = H * W
    C_pad = ((C + 7) // 8) * 8            # sublane-tile aligned channel count

    steps = _num_grid_steps(B)            # 2 on megacore chips, else 1
    B_pad = ((B + steps - 1) // steps) * steps
    G = B_pad // steps                     # images folded onto lanes per step
    N = G * HW                             # lane extent per block

    x = x_nchw.astype(jnp.float32)
    if B_pad != B:
        x = jnp.pad(x, ((0, B_pad - B), (0, 0), (0, 0), (0, 0)))
    if C_pad != C:
        x = jnp.pad(x, ((0, 0), (0, C_pad - C), (0, 0), (0, 0)))
    # (B_pad, C_pad, H, W) -> (steps, C_pad, G*HW): fold G images onto lanes.
    x2 = (x.reshape(steps, G, C_pad, HW)
           .transpose(0, 2, 1, 3)
           .reshape(steps, C_pad, N))

    def to_mat(w):
        # OIHW (co, ci, dy, dx) -> (co, (dy*3 + dx)*C_pad + ci) == (C_pad, 9*C_pad)
        wp = jnp.pad(w.astype(jnp.float32),
                     ((0, C_pad - C), (0, C_pad - C), (0, 0), (0, 0)))
        return jnp.transpose(wp, (0, 2, 3, 1)).reshape(C_pad, 9 * C_pad)

    def to_bias(b):
        return jnp.pad(b.astype(jnp.float32), (0, C_pad - C)).reshape(C_pad, 1)

    w1m, w2m = to_mat(w1), to_mat(w2)
    b1c, b2c = to_bias(b1), to_bias(b2)

    # Hoisted boundary masks: per-tap in-bounds mask for one image, tiled across
    # the G folded images and broadcast over channels -> (9*C_pad, N) f32.
    offsets = [(dy - 1, dx - 1) for dy in range(3) for dx in range(3)]
    col = jnp.arange(HW, dtype=jnp.int32)
    h_idx, w_idx = col // W, col % W
    rows = []
    for oy, ox in offsets:
        rows.append((h_idx + oy >= 0) & (h_idx + oy < H)
                    & (w_idx + ox >= 0) & (w_idx + ox < W))
    mask9 = jnp.stack(rows).astype(jnp.float32)                 # (9, HW)
    mask9 = jnp.tile(mask9, (1, G))                             # (9, N)
    mask = jnp.broadcast_to(mask9[:, None, :], (9, C_pad, N)).reshape(9 * C_pad, N)

    kernel = _make_residual_block_kernel(W, C_pad, N)

    # NOTE: keep f32 MXU operands here — at C_pad=8, K=72 the kernel is
    # overhead/latency-bound; cast operands to bf16 (f32 accumulation) once C >= 64.
    out = pl.pallas_call(
        kernel,
        out_shape=jax.ShapeDtypeStruct((steps, C_pad, N), jnp.float32),
        grid_spec=pltpu.PrefetchScalarGridSpec(
            num_scalar_prefetch=0,
            grid=(steps,),
            in_specs=[
                pl.BlockSpec((1, C_pad, N), lambda s: (s, 0, 0)),
                pl.BlockSpec((C_pad, 9 * C_pad), lambda s: (0, 0)),
                pl.BlockSpec((C_pad, 1), lambda s: (0, 0)),
                pl.BlockSpec((C_pad, 9 * C_pad), lambda s: (0, 0)),
                pl.BlockSpec((C_pad, 1), lambda s: (0, 0)),
                pl.BlockSpec((9 * C_pad, N), lambda s: (0, 0)),
            ],
            out_specs=pl.BlockSpec((1, C_pad, N), lambda s: (s, 0, 0)),
        ),
        compiler_params=pltpu.CompilerParams(
            dimension_semantics=("parallel",),
        ),
    )(x2, w1m, b1c, w2m, b2c, mask)

    out = (out.reshape(steps, C_pad, G, HW)
              .transpose(0, 2, 1, 3)
              .reshape(B_pad, C_pad, H, W))
    return out[:B, :C]


def reference_forward(x, w1, b1, w2, b2):
    """Pure-JAX reference matching the PyTorch module (NCHW)."""
    def conv(y, w, b):
        out = jax.lax.conv_general_dilated(
            y, w, window_strides=(1, 1), padding="SAME",
            dimension_numbers=("NCHW", "OIHW", "NCHW"),
        )
        return out + b.reshape(1, -1, 1, 1)

    h = conv(jax.nn.relu(x), w1, b1)
    h = conv(jax.nn.relu(h), w2, b2)
    return x + h


if __name__ == "__main__":
    # Shapes consistent with ResidualBlock(dim=4) on a 16x16 feature map.
    B, C, H, W = 2, 4, 16, 16

    key = jax.random.PRNGKey(0)
    kx, kw1, kb1, kw2, kb2 = jax.random.split(key, 5)

    x = jax.random.normal(kx, (B, C, H, W), dtype=jnp.float32)

    fan_in = C * 3 * 3
    bound = 1.0 / (fan_in ** 0.5)
    w1 = jax.random.uniform(kw1, (C, C, 3, 3), jnp.float32, -bound, bound)
    b1 = jax.random.uniform(kb1, (C,), jnp.float32, -bound, bound)
    w2 = jax.random.uniform(kw2, (C, C, 3, 3), jnp.float32, -bound, bound)
    b2 = jax.random.uniform(kb2, (C,), jnp.float32, -bound, bound)

    out = jax.block_until_ready(residual_block(x, w1, b1, w2, b2))
    ref = jax.block_until_ready(reference_forward(x, w1, b1, w2, b2))

    assert out.shape == (B, C, H, W)
    assert jnp.allclose(out, ref, atol=1e-4, rtol=1e-4), (
        f"max abs err = {float(jnp.max(jnp.abs(out - ref)))}"
    )
    print("KERNEL_OK")
</pallas_src>

<mosaic_0001>
module attributes {stable_mosaic.version = 11 : i64} {
  func.func @kernel(%arg0: i32, %arg1: memref<1x8x512xf32, #tpu.memory_space<vmem>>, %arg2: memref<8x72xf32, #tpu.memory_space<vmem>>, %arg3: memref<8x1xf32, #tpu.memory_space<vmem>>, %arg4: memref<8x72xf32, #tpu.memory_space<vmem>>, %arg5: memref<8x1xf32, #tpu.memory_space<vmem>>, %arg6: memref<72x512xf32, #tpu.memory_space<vmem>>, %arg7: memref<1x8x512xf32, #tpu.memory_space<vmem>>) attributes {dimension_semantics = [#tpu.dimension_semantics<parallel>], iteration_bounds = array<i64: 1>, scalar_prefetch = 0 : i64, scratch_operands = 0 : i64, tpu.core_type = #tpu.core_type<tc>, window_params = [{transform_indices = @transform_0, window_bounds = array<i64: 1, 8, 512>}, {pipeline_mode = #tpu.pipeline_mode<synchronous>, transform_indices = @transform_1, window_bounds = array<i64: 8, 72>}, {pipeline_mode = #tpu.pipeline_mode<synchronous>, transform_indices = @transform_2, window_bounds = array<i64: 8, 1>}, {pipeline_mode = #tpu.pipeline_mode<synchronous>, transform_indices = @transform_3, window_bounds = array<i64: 8, 72>}, {pipeline_mode = #tpu.pipeline_mode<synchronous>, transform_indices = @transform_4, window_bounds = array<i64: 8, 1>}, {pipeline_mode = #tpu.pipeline_mode<synchronous>, transform_indices = @transform_5, window_bounds = array<i64: 72, 512>}, {transform_indices = @transform_6, window_bounds = array<i64: 1, 8, 512>}]} {
    %c0 = arith.constant 0 : index
    %c0_0 = arith.constant 0 : index
    %c0_1 = arith.constant 0 : index
    %0 = vector.load %arg1[%c0, %c0_0, %c0_1] : memref<1x8x512xf32, #tpu.memory_space<vmem>>, vector<1x8x512xf32>
    %1 = vector.shape_cast %0 : vector<1x8x512xf32> to vector<8x512xf32>
    %cst = arith.constant 0.000000e+00 : f32
    %2 = vector.broadcast %cst : f32 to vector<8x512xf32>
    %3 = arith.maximumf %1, %2 : vector<8x512xf32>
    %c17_i32 = arith.constant 17 : i32
    %4 = tpu.dynamic_rotate %3 by %c17_i32 dim 1 : vector<8x512xf32>, i32 -> vector<8x512xf32>
    %c0_2 = arith.constant 0 : index
    %c0_3 = arith.constant 0 : index
    %5 = vector.load %arg6[%c0_2, %c0_3] : memref<72x512xf32, #tpu.memory_space<vmem>>, vector<8x512xf32>
    %6 = arith.mulf %4, %5 : vector<8x512xf32>
    %c16_i32 = arith.constant 16 : i32
    %7 = tpu.dynamic_rotate %3 by %c16_i32 dim 1 : vector<8x512xf32>, i32 -> vector<8x512xf32>
    %c8 = arith.constant 8 : index
    %c0_4 = arith.constant 0 : index
    %8 = vector.load %arg6[%c8, %c0_4] : memref<72x512xf32, #tpu.memory_space<vmem>>, vector<8x512xf32>
    %9 = arith.mulf %7, %8 : vector<8x512xf32>
    %c15_i32 = arith.constant 15 : i32
    %10 = tpu.dynamic_rotate %3 by %c15_i32 dim 1 : vector<8x512xf32>, i32 -> vector<8x512xf32>
    %c16 = arith.constant 16 : index
    %c0_5 = arith.constant 0 : index
    %11 = vector.load %arg6[%c16, %c0_5] : memref<72x512xf32, #tpu.memory_space<vmem>>, vector<8x512xf32>
    %12 = arith.mulf %10, %11 : vector<8x512xf32>
    %c1_i32 = arith.constant 1 : i32
    %13 = tpu.dynamic_rotate %3 by %c1_i32 dim 1 : vector<8x512xf32>, i32 -> vector<8x512xf32>
    %c24 = arith.constant 24 : index
    %c0_6 = arith.constant 0 : index
    %14 = vector.load %arg6[%c24, %c0_6] : memref<72x512xf32, #tpu.memory_space<vmem>>, vector<8x512xf32>
    %15 = arith.mulf %13, %14 : vector<8x512xf32>
    %c511_i32 = arith.constant 511 : i32
    %16 = tpu.dynamic_rotate %3 by %c511_i32 dim 1 : vector<8x512xf32>, i32 -> vector<8x512xf32>
    %c40 = arith.constant 40 : index
    %c0_7 = arith.constant 0 : index
    %17 = vector.load %arg6[%c40, %c0_7] : memref<72x512xf32, #tpu.memory_space<vmem>>, vector<8x512xf32>
    %18 = arith.mulf %16, %17 : vector<8x512xf32>
    %c497_i32 = arith.constant 497 : i32
    %19 = tpu.dynamic_rotate %3 by %c497_i32 dim 1 : vector<8x512xf32>, i32 -> vector<8x512xf32>
    %c48 = arith.constant 48 : index
    %c0_8 = arith.constant 0 : index
    %20 = vector.load %arg6[%c48, %c0_8] : memref<72x512xf32, #tpu.memory_space<vmem>>, vector<8x512xf32>
    %21 = arith.mulf %19, %20 : vector<8x512xf32>
    %c496_i32 = arith.constant 496 : i32
    %22 = tpu.dynamic_rotate %3 by %c496_i32 dim 1 : vector<8x512xf32>, i32 -> vector<8x512xf32>
    %c56 = arith.constant 56 : index
    %c0_9 = arith.constant 0 : index
    %23 = vector.load %arg6[%c56, %c0_9] : memref<72x512xf32, #tpu.memory_space<vmem>>, vector<8x512xf32>
    %24 = arith.mulf %22, %23 : vector<8x512xf32>
    %c495_i32 = arith.constant 495 : i32
    %25 = tpu.dynamic_rotate %3 by %c495_i32 dim 1 : vector<8x512xf32>, i32 -> vector<8x512xf32>
    %c64 = arith.constant 64 : index
    %c0_10 = arith.constant 0 : index
    %26 = vector.load %arg6[%c64, %c0_10] : memref<72x512xf32, #tpu.memory_space<vmem>>, vector<8x512xf32>
    %27 = arith.mulf %25, %26 : vector<8x512xf32>
    %28 = tpu.concatenate %6, %9, %12, %15, %3, %18, %21, %24, %27 in 0 : vector<8x512xf32>, vector<8x512xf32>, vector<8x512xf32>, vector<8x512xf32>, vector<8x512xf32>, vector<8x512xf32>, vector<8x512xf32>, vector<8x512xf32>, vector<8x512xf32> -> vector<72x512xf32>
    %c0_11 = arith.constant 0 : index
    %c0_12 = arith.constant 0 : index
    %29 = vector.load %arg2[%c0_11, %c0_12] : memref<8x72xf32, #tpu.memory_space<vmem>>, vector<8x72xf32>
    %cst_13 = arith.constant dense<0.000000e+00> : vector<8x512xf32>
    %30 = tpu.matmul %29, %28, %cst_13 {dimension_numbers = #tpu.dot_dimension_numbers<[1], [0], [0], [1], [0, 0, 1, 1], [], []>} : vector<8x72xf32>, vector<72x512xf32>, vector<8x512xf32> -> vector<8x512xf32>
    %c0_14 = arith.constant 0 : index
    %c0_15 = arith.constant 0 : index
    %31 = vector.load %arg3[%c0_14, %c0_15] : memref<8x1xf32, #tpu.memory_space<vmem>>, vector<8x1xf32>
    %32 = vector.broadcast %31 : vector<8x1xf32> to vector<8x512xf32>
    %33 = arith.addf %30, %32 : vector<8x512xf32>
    %cst_16 = arith.constant 0.000000e+00 : f32
    %34 = vector.broadcast %cst_16 : f32 to vector<8x512xf32>
    %35 = arith.maximumf %33, %34 : vector<8x512xf32>
    %c17_i32_17 = arith.constant 17 : i32
    %36 = tpu.dynamic_rotate %35 by %c17_i32_17 dim 1 : vector<8x512xf32>, i32 -> vector<8x512xf32>
    %c0_18 = arith.constant 0 : index
    %c0_19 = arith.constant 0 : index
    %37 = vector.load %arg6[%c0_18, %c0_19] : memref<72x512xf32, #tpu.memory_space<vmem>>, vector<8x512xf32>
    %38 = arith.mulf %36, %37 : vector<8x512xf32>
    %c16_i32_20 = arith.constant 16 : i32
    %39 = tpu.dynamic_rotate %35 by %c16_i32_20 dim 1 : vector<8x512xf32>, i32 -> vector<8x512xf32>
    %c8_21 = arith.constant 8 : index
    %c0_22 = arith.constant 0 : index
    %40 = vector.load %arg6[%c8_21, %c0_22] : memref<72x512xf32, #tpu.memory_space<vmem>>, vector<8x512xf32>
    %41 = arith.mulf %39, %40 : vector<8x512xf32>
    %c15_i32_23 = arith.constant 15 : i32
    %42 = tpu.dynamic_rotate %35 by %c15_i32_23 dim 1 : vector<8x512xf32>, i32 -> vector<8x512xf32>
    %c16_24 = arith.constant 16 : index
    %c0_25 = arith.constant 0 : index
    %43 = vector.load %arg6[%c16_24, %c0_25] : memref<72x512xf32, #tpu.memory_space<vmem>>, vector<8x512xf32>
    %44 = arith.mulf %42, %43 : vector<8x512xf32>
    %c1_i32_26 = arith.constant 1 : i32
    %45 = tpu.dynamic_rotate %35 by %c1_i32_26 dim 1 : vector<8x512xf32>, i32 -> vector<8x512xf32>
    %c24_27 = arith.constant 24 : index
    %c0_28 = arith.constant 0 : index
    %46 = vector.load %arg6[%c24_27, %c0_28] : memref<72x512xf32, #tpu.memory_space<vmem>>, vector<8x512xf32>
    %47 = arith.mulf %45, %46 : vector<8x512xf32>
    %c511_i32_29 = arith.constant 511 : i32
    %48 = tpu.dynamic_rotate %35 by %c511_i32_29 dim 1 : vector<8x512xf32>, i32 -> vector<8x512xf32>
    %c40_30 = arith.constant 40 : index
    %c0_31 = arith.constant 0 : index
    %49 = vector.load %arg6[%c40_30, %c0_31] : memref<72x512xf32, #tpu.memory_space<vmem>>, vector<8x512xf32>
    %50 = arith.mulf %48, %49 : vector<8x512xf32>
    %c497_i32_32 = arith.constant 497 : i32
    %51 = tpu.dynamic_rotate %35 by %c497_i32_32 dim 1 : vector<8x512xf32>, i32 -> vector<8x512xf32>
    %c48_33 = arith.constant 48 : index
    %c0_34 = arith.constant 0 : index
    %52 = vector.load %arg6[%c48_33, %c0_34] : memref<72x512xf32, #tpu.memory_space<vmem>>, vector<8x512xf32>
    %53 = arith.mulf %51, %52 : vector<8x512xf32>
    %c496_i32_35 = arith.constant 496 : i32
    %54 = tpu.dynamic_rotate %35 by %c496_i32_35 dim 1 : vector<8x512xf32>, i32 -> vector<8x512xf32>
    %c56_36 = arith.constant 56 : index
    %c0_37 = arith.constant 0 : index
    %55 = vector.load %arg6[%c56_36, %c0_37] : memref<72x512xf32, #tpu.memory_space<vmem>>, vector<8x512xf32>
    %56 = arith.mulf %54, %55 : vector<8x512xf32>
    %c495_i32_38 = arith.constant 495 : i32
    %57 = tpu.dynamic_rotate %35 by %c495_i32_38 dim 1 : vector<8x512xf32>, i32 -> vector<8x512xf32>
    %c64_39 = arith.constant 64 : index
    %c0_40 = arith.constant 0 : index
    %58 = vector.load %arg6[%c64_39, %c0_40] : memref<72x512xf32, #tpu.memory_space<vmem>>, vector<8x512xf32>
    %59 = arith.mulf %57, %58 : vector<8x512xf32>
    %60 = tpu.concatenate %38, %41, %44, %47, %35, %50, %53, %56, %59 in 0 : vector<8x512xf32>, vector<8x512xf32>, vector<8x512xf32>, vector<8x512xf32>, vector<8x512xf32>, vector<8x512xf32>, vector<8x512xf32>, vector<8x512xf32>, vector<8x512xf32> -> vector<72x512xf32>
    %c0_41 = arith.constant 0 : index
    %c0_42 = arith.constant 0 : index
    %61 = vector.load %arg4[%c0_41, %c0_42] : memref<8x72xf32, #tpu.memory_space<vmem>>, vector<8x72xf32>
    %cst_43 = arith.constant dense<0.000000e+00> : vector<8x512xf32>
    %62 = tpu.matmul %61, %60, %cst_43 {dimension_numbers = #tpu.dot_dimension_numbers<[1], [0], [0], [1], [0, 0, 1, 1], [], []>} : vector<8x72xf32>, vector<72x512xf32>, vector<8x512xf32> -> vector<8x512xf32>
    %c0_44 = arith.constant 0 : index
    %c0_45 = arith.constant 0 : index
    %63 = vector.load %arg5[%c0_44, %c0_45] : memref<8x1xf32, #tpu.memory_space<vmem>>, vector<8x1xf32>
    %64 = vector.broadcast %63 : vector<8x1xf32> to vector<8x512xf32>
    %65 = arith.addf %62, %64 : vector<8x512xf32>
    %66 = arith.addf %1, %65 : vector<8x512xf32>
    %c0_46 = arith.constant 0 : index
    %c0_47 = arith.constant 0 : index
    %c0_48 = arith.constant 0 : index
    %67 = vector.load %arg7[%c0_46, %c0_47, %c0_48] : memref<1x8x512xf32, #tpu.memory_space<vmem>>, vector<1x8x512xf32>
    %68 = vector.shape_cast %67 : vector<1x8x512xf32> to vector<8x512xf32>
    %69 = vector.shape_cast %66 : vector<8x512xf32> to vector<1x8x512xf32>
    tpu.vector_store %arg7[%c0_46, %c0_47, %c0_48], %69 {strides = array<i32>} : memref<1x8x512xf32, #tpu.memory_space<vmem>>, vector<1x8x512xf32>,
    return
  }
  func.func @transform_0(%arg0: i32) -> (i32, i32, i32) {
    %c0_i32 = arith.constant 0 : i32
    %c0_i32_0 = arith.constant 0 : i32
    %c0_i32_1 = arith.constant 0 : i32
    return %arg0, %c0_i32, %c0_i32_0 : i32, i32, i32
  }
  func.func @transform_1(%arg0: i32) -> (i32, i32) {
    %c0_i32 = arith.constant 0 : i32
    %c0_i32_0 = arith.constant 0 : i32
    %c0_i32_1 = arith.constant 0 : i32
    return %c0_i32, %c0_i32_0 : i32, i32
  }
  func.func @transform_2(%arg0: i32) -> (i32, i32) {
    %c0_i32 = arith.constant 0 : i32
    %c0_i32_0 = arith.constant 0 : i32
    %c0_i32_1 = arith.constant 0 : i32
    return %c0_i32, %c0_i32_0 : i32, i32
  }
  func.func @transform_3(%arg0: i32) -> (i32, i32) {
    %c0_i32 = arith.constant 0 : i32
    %c0_i32_0 = arith.constant 0 : i32
    %c0_i32_1 = arith.constant 0 : i32
    return %c0_i32, %c0_i32_0 : i32, i32
  }
  func.func @transform_4(%arg0: i32) -> (i32, i32) {
    %c0_i32 = arith.constant 0 : i32
    %c0_i32_0 = arith.constant 0 : i32
    %c0_i32_1 = arith.constant 0 : i32
    return %c0_i32, %c0_i32_0 : i32, i32
  }
  func.func @transform_5(%arg0: i32) -> (i32, i32) {
    %c0_i32 = arith.constant 0 : i32
    %c0_i32_0 = arith.constant 0 : i32
    %c0_i32_1 = arith.constant 0 : i32
    return %c0_i32, %c0_i32_0 : i32, i32
  }
  func.func @transform_6(%arg0: i32) -> (i32, i32, i32) {
    %c0_i32 = arith.constant 0 : i32
    %c0_i32_0 = arith.constant 0 : i32
    %c0_i32_1 = arith.constant 0 : i32
    return %arg0, %c0_i32, %c0_i32_0 : i32, i32, i32
  }
}

</mosaic_0001>

<bundles_post_ra>
// kernel: tpu_custom_call.1
= control target key start
LH: loop header
LB: loop body
LE: loop exit
PB: predicated region body
PF: predicated region fallthrough
CT: control target
= control target key end

     0   :  { %11 = vsyncpa [#allocation3], 0  ;;  %s1210_s0 = inlined_call_operand.hbm [shape: f32[1,8,512], index: 0, kind: input, shape index: {}]   ;;  %s1211_s1 = inlined_call_operand.vmem [shape: f32[8,72], index: 1, kind: input, shape index: {}]   ;;  %s1212_s2 = inlined_call_operand.vmem [shape: f32[8,1], index: 2, kind: input, shape index: {}]   ;;  %s1213_s3 = inlined_call_operand.vmem [shape: f32[8,72], index: 3, kind: input, shape index: {}]   ;;  %s1214_s4 = inlined_call_operand.vmem [shape: f32[8,1], index: 4, kind: input, shape index: {}]   ;;  %s1215_s5 = inlined_call_operand.hbm [shape: f32[72,512], index: 5, kind: input, shape index: {}]   ;;  %s1216_s6 = inlined_call_operand.hbm [shape: f32[1,8,512], index: 6, kind: output, shape index: {}]  }
   0x1   :  { %12 = vsyncpa [#allocation6], 0 }
   0x2   :  { %13 = vsyncpa [#allocation4], 0  ;;  %s19_s23 = sshll.u32 %s1210_s0, 4  ;;  %s673_s24 = smov [#allocation2]   ;;  %s20_s23 = int_to_ptr.hbm [resolvable:$true] %s19_s23 }
   0x3   :  { %s21_s25 = sshll.u32 %s673_s24, 4  ;;  %s37_s28 = sshll.u32 %s1215_s5, 4  ;;  %s22_s25 = int_to_ptr.vmem [resolvable:$true] %s21_s25  ;;  %s38_s28 = int_to_ptr.hbm [resolvable:$true] %s37_s28 }
   0x4   :  { %24 = dma.hbm_to_vmem [thread:$0]  %s20_s23, 512, %s22_s25, [#allocation3]  }
   0x5   :  { %s674_s29 = smov [#allocation5]   ;;  %s675_s7 = smov 512  }
   0x6   :  { %s39_s30 = sshll.u32 %s674_s29, 4  ;;  %s676_s8 = smov 32   ;;  %s40_s30 = int_to_ptr.vmem [resolvable:$true] %s39_s30 }
   0x7   :  { %45 = dma.hbm_to_vmem [thread:$0]  %s38_s28, 4608, %s40_s30, [#allocation6], %s675_s7, %s675_s7, %s676_s8  }
   0x8   :  { %667 = dma.done.wait [#allocation3], 512  }
   0x9   :  { %668 = vsyncadd [#allocation3], 4294966784 }
   0xa   :  { %669 = dma.done.wait [#allocation6], 4608  }
   0xb   :  { %670 = vsyncadd [#allocation6], 4294962688  ;;  %v728_v0 = vld [vmem:[#allocation2 + $0x18] sm:$0xff]  ;;  %v730_v1 = vld [vmem:[#allocation2 + $0x10] sm:$0xff]  ;;  %s677_s0 = smov 111   ;;  %s678_s5 = smov 112   ;;  %v70_v10 = vlaneseq }
   0xc   :  { %v732_v2 = vld [vmem:[#allocation2] sm:$0xff]  ;;  %v735_v3 = vmax.f32 %v728_v0, 0.0  ;;  %v738_v4 = vmax.f32 %v730_v1, 0.0  ;;  %s679_s9 = smov 113   ;;  %s680_s10 = smov 127   ;;  %v767_v6 = vld [vmem:[#allocation2 + $0x8] sm:$0xff] }
   0xd   :  { %v741_v5 = vmax.f32 %v732_v2, 0.0  ;;  %v770_v7 = vmax.f32 %v767_v6, 0.0  ;;  %s681_s11 = smov 1   ;;  %s682_s12 = smov 15   ;;  %v812_v11 = vand.u32 127, %v70_v10  ;;  %v815_v14 = vld [vmem:[#allocation5 + $0x118] sm:$0xff] }
   0xe   :  { %217 = vrot.lane.b32.xlu1 %v735_v3, %s677_s0  ;;  %194 = vrot.lane.b32.xlu2 %v738_v4, %s678_s5  ;;  %s683_s13 = smov 16   ;;  %s684_s14 = smov 17   ;;  %v821_v18 = vld [vmem:[#allocation5 + $0xf8] sm:$0xff]  ;;  %v823_v20 = vld [vmem:[#allocation5 + $0x110] sm:$0xff]  ;;  %v868_v49 = vld [vmem:[#allocation5 + $0x100] sm:$0xff]  ;;  %vm239_vm8 = vcmask 588800  }
   0xf   :  { %211 = vrot.lane.b32.xlu0 %v741_v5, %s677_s0  ;;  %vm219_vm0 = vcmp.lt.s32.totalorder %v812_v11, 111  ;;  %vm198_vm1 = vcmp.lt.s32.totalorder %v812_v11, 112  ;;  %v831_v26 = vld [vmem:[#allocation5 + $0xf0] sm:$0xff]  ;;  %vm177_vm2 = vcmp.lt.s32.totalorder %v812_v11, 113  ;;  %v839_v32 = vld [vmem:[#allocation5 + $0xd8] sm:$0xff]  ;;  %vm156_vm3 = vcmp.lt.s32.totalorder %v812_v11, 127 }
  0x10   :  { %v837_v30 = vld [vmem:[#allocation5 + $0xd0] sm:$0xff]  ;;  %v854_v41 = vld [vmem:[#allocation5 + $0xb8] sm:$0xff]  ;;  %v870_v50 = vld [vmem:[#allocation5 + $0x108] sm:$0xff]  ;;  %vm135_vm4 = vcmp.lt.s32.totalorder %v812_v11, 1  ;;  %vm114_vm5 = vcmp.lt.s32.totalorder %v812_v11, 15  ;;  %vm93_vm6 = vcmp.lt.s32.totalorder %v812_v11, 16 }
  0x11   :  { %v850_v39 = vld [vmem:[#allocation5 + $0xb0] sm:$0xff]  ;;  %v880_v56 = vld [vmem:[#allocation5 + $0xe0] sm:$0xff]  ;;  %v882_v57 = vld [vmem:[#allocation5 + $0xe8] sm:$0xff]  ;;  %vm72_vm7 = vcmp.lt.s32.totalorder %v812_v11, 17  ;;  %s560_s23 = sshll.u32 %s1216_s6, 4  ;;  %s561_s23 = int_to_ptr.hbm [resolvable:$true] %s560_s23 }
  0x12   :  { %v890_v62 = vld [vmem:[#allocation5 + $0xc0] sm:$0xff]  ;;  %v892_v63 = vld [vmem:[#allocation5 + $0xc8] sm:$0xff] }
  0x16   :  { %196 = vrot.lane.b32.xlu2 %v735_v3, %s678_s5  ;;  %190 = vrot.lane.b32.xlu1 %v741_v5, %s678_s5 }
  0x17   :  { %215 = vrot.lane.b32.xlu0 %v738_v4, %s677_s0 }
  0x1e   :  { %175 = vrot.lane.b32.xlu2 %v735_v3, %s679_s9  ;;  %173 = vrot.lane.b32.xlu1 %v738_v4, %s679_s9 }
  0x1f   :  { %169 = vrot.lane.b32.xlu0 %v741_v5, %s679_s9 }
  0x26   :  { %154 = vrot.lane.b32.xlu2 %v735_v3, %s680_s10  ;;  %152 = vrot.lane.b32.xlu1 %v738_v4, %s680_s10 }
  0x27   :  { %148 = vrot.lane.b32.xlu0 %v741_v5, %s680_s10 }
  0x2e   :  { %129 = vrot.lane.b32.xlu2 %v770_v7, %s681_s11  ;;  %192 = vrot.lane.b32.xlu1 %v770_v7, %s678_s5 }
  0x2f   :  { %213 = vrot.lane.b32.xlu0 %v770_v7, %s677_s0 }
  0x36   :  { %171 = vrot.lane.b32.xlu2 %v770_v7, %s679_s9  ;;  %133 = vrot.lane.b32.xlu1 %v735_v3, %s681_s11 }
  0x37   :  { %131 = vrot.lane.b32.xlu0 %v738_v4, %s681_s11 }
  0x3e   :  { %112 = vrot.lane.b32.xlu2 %v735_v3, %s682_s12  ;;  %110 = vrot.lane.b32.xlu1 %v738_v4, %s682_s12 }
  0x3f   :  { %108 = vrot.lane.b32.xlu0 %v770_v7, %s682_s12 }
  0x46   :  { %89 = vrot.lane.b32.xlu2 %v738_v4, %s683_s13  ;;  %87 = vrot.lane.b32.xlu1 %v770_v7, %s683_s13 }
  0x47   :  { %150 = vrot.lane.b32.xlu0 %v770_v7, %s680_s10 }
  0x4e   :  { %66 = vrot.lane.b32.xlu2 %v738_v4, %s684_s14  ;;  %64 = vrot.lane.b32.xlu1 %v770_v7, %s684_s14 }
  0x4f   :  { %91 = vrot.lane.b32.xlu0 %v735_v3, %s683_s13 }
  0x56   :  { %106 = vrot.lane.b32.xlu2 %v741_v5, %s682_s12  ;;  %127 = vrot.lane.b32.xlu1 %v741_v5, %s681_s11 }
  0x57   :  { %68 = vrot.lane.b32.xlu0 %v735_v3, %s684_s14 }
  0x5e   :  { %62 = vrot.lane.b32.xlu1 %v741_v5, %s684_s14 }
  0x5f   :  { %85 = vrot.lane.b32.xlu0 %v741_v5, %s683_s13 }
  0x68   :  { %v195_v8 = vpop.permute.xlu2 %194 }
  0x70   :  { %v197_v9 = vpop.permute.xlu2 %196 }
  0x71   :  { %v199_v23 = vsel %vm198_vm1, %v195_v8, %v197_v9 }
  0x72   :  { %v209_v29 = vmul.f32 %v831_v26, %v199_v23  ;;  %v916_v23 = vld [vmem:[#allocation5 + $0x58] sm:$0xff] }
  0x78   :  { %v176_v12 = vpop.permute.xlu2 %175 }
  0x80   :  { %v218_v13 = vpop.permute.xlu1 %217  ;;  %v155_v24 = vpop.permute.xlu2 %154 }
  0x81   :  { %v212_v15 = vpop.permute.xlu0 %211 }
  0x82   :  { %v223_v16 = vsel %vm219_vm0, %v218_v13, %v212_v15 }
  0x83   :  { %v231_v17 = vmul.f32 %v815_v14, %v223_v16 }
  0x85   :  { %310 = vmatpush.msra.mxu3 %v231_v17 }
  0x88   :  { %v191_v19 = vpop.permute.xlu1 %190  ;;  %v847_v38 = vpop.permute.xlu2 %129 }
  0x89   :  { %v202_v21 = vsel %vm198_vm1, %v197_v9, %v191_v19  ;;  %v216_v22 = vpop.permute.xlu0 %215 }
  0x8a   :  { %v220_v25 = vsel %vm219_vm0, %v216_v22, %v218_v13  ;;  %v210_v27 = vmul.f32 %v821_v18, %v202_v21  ;;  %v903_v13 = vld [vmem:[#allocation5 + $0x70] sm:$0xff] }
  0x8b   :  { %v230_v28 = vmul.f32 %v823_v20, %v220_v25  ;;  %v918_v25 = vld [vmem:[#allocation5 + $0x50] sm:$0xff] }
  0x8c   :  { %311 = vmatpush.msra.mxu3 %v210_v27 }
  0x8d   :  { %290 = vmatpush.msra.mxu2 %v230_v28 }
  0x8f   :  { %291 = vmatpush.msra.mxu2 %v209_v29 }
  0x90   :  { %v174_v31 = vpop.permute.xlu1 %173  ;;  %v172_v47 = vpop.permute.xlu2 %171 }
  0x91   :  { %v178_v33 = vsel %vm177_vm2, %v174_v31, %v176_v12  ;;  %v170_v34 = vpop.permute.xlu0 %169  ;;  %v179_v60 = vsel %vm177_vm2, %v172_v47, %v174_v31 }
  0x92   :  { %v181_v35 = vsel %vm177_vm2, %v176_v12, %v170_v34  ;;  %v188_v36 = vmul.f32 %v837_v30, %v178_v33  ;;  %v180_v61 = vsel %vm177_vm2, %v170_v34, %v172_v47  ;;  %v187_v9 = vmul.f32 %v892_v63, %v179_v60 }
  0x93   :  { %v189_v37 = vmul.f32 %v839_v32, %v181_v35  ;;  %v928_v35 = vld [vmem:[#allocation5 + $0x30] sm:$0xff]  ;;  %v685_v47 = vmov 0  }
  0x94   :  { %292 = vmatpush.msra.mxu2 %v188_v36  ;;  %593 = vset.pattern.permute.xlu2 %v685_v47 }
  0x95   :  { %312 = vmatpush.msra.mxu3 %v189_v37  ;;  %v932_v37 = vld [vmem:[#allocation5 + $0xa0] sm:$0xff]  ;;  %594 = vset.pattern.permute.xlu0 %v685_v47 }
  0x98   :  { %v852_v40 = vpop.permute.xlu1 %152  ;;  %v899_v10 = vpop.permute.xlu2 %112 }
  0x99   :  { %v157_v42 = vsel %vm156_vm3, %v852_v40, %v155_v24  ;;  %v859_v43 = vpop.permute.xlu0 %148 }
  0x9a   :  { %v160_v44 = vsel %vm156_vm3, %v155_v24, %v859_v43  ;;  %v167_v45 = vmul.f32 %v850_v39, %v157_v42  ;;  %v934_v42 = vld [vmem:[#allocation5 + $0xa8] sm:$0xff] }
  0x9b   :  { %v168_v46 = vmul.f32 %v854_v41, %v160_v44  ;;  %v233_v44 = vld [vmem:[%s1212_s2] sm:$0xff] }
  0x9c   :  { %293 = vmatpush.msra.mxu2 %v167_v45  ;;  %236 = vperm.xlu2 %593, %v233_v44  }
  0x9d   :  { %313 = vmatpush.msra.mxu3 %v168_v46 }
  0x9e   :  { %294 = vmatpush.msra.mxu2 %v738_v4 }
  0x9f   :  { %314 = vmatpush.msra.mxu3 %v735_v3 }
  0xa0   :  { %v193_v48 = vpop.permute.xlu1 %192  ;;  %v90_v29 = vpop.permute.xlu2 %89 }
  0xa1   :  { %v214_v51 = vpop.permute.xlu0 %213  ;;  %v200_v52 = vsel %vm198_vm1, %v193_v48, %v195_v8  ;;  %v201_v53 = vsel %vm198_vm1, %v191_v19, %v193_v48  ;;  %v186_v8 = vmul.f32 %v890_v62, %v180_v61 }
  0xa2   :  { %v222_v54 = vsel %vm219_vm0, %v212_v15, %v214_v51  ;;  %v221_v55 = vsel %vm219_vm0, %v214_v51, %v216_v22  ;;  %v207_v3 = vmul.f32 %v880_v56, %v201_v53  ;;  %v208_v4 = vmul.f32 %v882_v57, %v200_v52  ;;  %v905_v15 = vld [vmem:[#allocation5 + $0x78] sm:$0xff] }
  0xa3   :  { %v228_v58 = vmul.f32 %v868_v49, %v222_v54  ;;  %v229_v59 = vmul.f32 %v870_v50, %v221_v55 }
  0xa5   :  { %250 = vmatpush.msra.mxu0 %v228_v58  ;;  %270 = vmatpush.msra.mxu1 %v229_v59  ;;  %v952_v58 = vld [vmem:[#allocation5 + $0x10] sm:$0xff] }
  0xa7   :  { %251 = vmatpush.msra.mxu0 %v207_v3  ;;  %271 = vmatpush.msra.mxu1 %v208_v4  ;;  %v232_v4 = vld [vmem:[%s1211_s1] sm:$0xff] }
  0xa8   :  { %v901_v12 = vpop.permute.xlu1 %133  ;;  %v67_v55 = vpop.permute.xlu2 %66 }
  0xa9   :  { %252 = vmatpush.msra.mxu0 %v186_v8  ;;  %272 = vmatpush.msra.mxu1 %v187_v9  ;;  %v132_v16 = vpop.permute.xlu0 %131  ;;  %v968_v8 = vld [vmem:[#allocation5 + $0x60] sm:$0xff]  ;;  %v970_v9 = vld [vmem:[#allocation5 + $0x68] sm:$0xff] }
  0xaa   :  { %v136_v17 = vsel %vm135_vm4, %v132_v16, %v901_v12  ;;  %v137_v19 = vsel %vm135_vm4, %v847_v38, %v132_v16 }
  0xab   :  { %v146_v21 = vmul.f32 %v903_v13, %v137_v19  ;;  %v147_v22 = vmul.f32 %v905_v15, %v136_v17  ;;  %v972_v17 = vld [vmem:[#allocation5 + $0x18] sm:$0xff] }
  0xad   :  { %295 = vmatpush.msra.mxu2 %v146_v21  ;;  %315 = vmatpush.msra.mxu3 %v147_v22 }
  0xb0   :  { %v111_v24 = vpop.permute.xlu1 %110 }
  0xb1   :  { %v115_v27 = vsel %vm114_vm5, %v111_v24, %v899_v10  ;;  %v109_v28 = vpop.permute.xlu0 %108 }
  0xb2   :  { %v116_v31 = vsel %vm114_vm5, %v109_v28, %v111_v24  ;;  %v126_v33 = vmul.f32 %v916_v23, %v115_v27 }
  0xb3   :  { %v125_v34 = vmul.f32 %v918_v25, %v116_v31  ;;  %v987_v31 = vld [vmem:[#allocation5 + $0x48] sm:$0xff] }
  0xb4   :  { %316 = vmatpush.msra.mxu3 %v126_v33 }
  0xb5   :  { %296 = vmatpush.msra.mxu2 %v125_v34 }
  0xb8   :  { %v930_v36 = vpop.permute.xlu1 %87 }
  0xb9   :  { %v95_v45 = vsel %vm93_vm6, %v930_v36, %v90_v29  ;;  %v151_v46 = vpop.permute.xlu0 %150 }
  0xba   :  { %v158_v48 = vsel %vm156_vm3, %v151_v46, %v852_v40  ;;  %v159_v51 = vsel %vm156_vm3, %v859_v43, %v151_v46  ;;  %v104_v52 = vmul.f32 %v928_v35, %v95_v45  ;;  %v956_v43 = vld [vmem:[#allocation5 + $0x38] sm:$0xff]  ;;  %v997_v45 = vld [vmem:[#allocation5 + $0x20] sm:$0xff]  ;;  %v999_v46 = vld [vmem:[#allocation5 + $0x28] sm:$0xff] }
  0xbb   :  { %v165_v53 = vmul.f32 %v932_v37, %v159_v51  ;;  %v166_v54 = vmul.f32 %v934_v42, %v158_v48 }
  0xbc   :  { %297 = vmatpush.msra.mxu2 %v104_v52 }
  0xbd   :  { %253 = vmatpush.msra.mxu0 %v165_v53  ;;  %273 = vmatpush.msra.mxu1 %v166_v54  ;;  %v1010_v54 = vld [vmem:[#allocation5] sm:$0xff] }
  0xbf   :  { %254 = vmatpush.msra.mxu0 %v741_v5  ;;  %274 = vmatpush.msra.mxu1 %v770_v7  ;;  %v107_v7 = vpop.permute.xlu2 %106 }
  0xc0   :  { %v65_v40 = vpop.permute.xlu1 %64  ;;  %v118_v19 = vsel %vm114_vm5, %v899_v10, %v107_v7  ;;  %v117_v21 = vsel %vm114_vm5, %v107_v7, %v109_v28 }
  0xc1   :  { %v74_v59 = vsel %vm72_vm7, %v65_v40, %v67_v55  ;;  %v92_v60 = vpop.permute.xlu0 %91 }
  0xc2   :  { %v94_v61 = vsel %vm93_vm6, %v90_v29, %v92_v60  ;;  %v83_v3 = vmul.f32 %v952_v58, %v74_v59  ;;  %v985_v29 = vld [vmem:[#allocation5 + $0x40] sm:$0xff] }
  0xc3   :  { %v105_v5 = vmul.f32 %v956_v43, %v94_v61 }
  0xc4   :  { %298 = vmatpush.msra.mxu2 %v83_v3 }
  0xc5   :  { %317 = vmatpush.msra.mxu3 %v105_v5  ;;  %573 = vmatmul.msk.f32.vlgmr.msra.gmra.mxu2 %vm239_vm8, %v232_v4 }
  0xc8   :  { %v128_v16 = vpop.permute.xlu1 %127 }
  0xc9   :  { %v138_v22 = vsel %vm135_vm4, %v128_v16, %v847_v38  ;;  %v139_v24 = vsel %vm135_vm4, %v901_v12, %v128_v16  ;;  %v69_v27 = vpop.permute.xlu0 %68  ;;  %v123_v38 = vmul.f32 %v985_v29, %v118_v19  ;;  %v124_v12 = vmul.f32 %v987_v31, %v117_v21 }
  0xca   :  { %v73_v33 = vsel %vm72_vm7, %v67_v55, %v69_v27  ;;  %v144_v10 = vmul.f32 %v968_v8, %v139_v24  ;;  %v145_v28 = vmul.f32 %v970_v9, %v138_v22  ;;  %v1012_v55 = vld [vmem:[#allocation5 + $0x8] sm:$0xff] }
  0xcb   :  { %v84_v34 = vmul.f32 %v972_v17, %v73_v33 }
  0xcc   :  { %255 = vmatpush.msra.mxu0 %v144_v10  ;;  %275 = vmatpush.msra.mxu1 %v145_v28  ;;  %v456_v28 = vld [vmem:[%s1214_s4] sm:$0xff] }
  0xcd   :  { %318 = vmatpush.msra.mxu3 %v84_v34 }
  0xce   :  { %256 = vmatpush.msra.mxu0 %v123_v38  ;;  %276 = vmatpush.msra.mxu1 %v124_v12 }
  0xcf   :  { %574 = vmatmul.msk.f32.vlgmr.msra.gmra.mxu3 %vm239_vm8, %v232_v4 }
  0xd0   :  { %v63_v44 = vpop.permute.xlu1 %62 }
  0xd1   :  { %v86_v47 = vpop.permute.xlu0 %85  ;;  %v75_v48 = vsel %vm72_vm7, %v63_v44, %v65_v40  ;;  %v76_v51 = vsel %vm72_vm7, %v69_v27, %v63_v44 }
  0xd2   :  { %v96_v52 = vsel %vm93_vm6, %v86_v47, %v930_v36  ;;  %v97_v53 = vsel %vm93_vm6, %v92_v60, %v86_v47  ;;  %v81_v40 = vmul.f32 %v1010_v54, %v76_v51  ;;  %v82_v3 = vmul.f32 %v1012_v55, %v75_v48 }
  0xd3   :  { %v102_v59 = vmul.f32 %v997_v45, %v97_v53  ;;  %v103_v61 = vmul.f32 %v999_v46, %v96_v52 }
  0xd5   :  { %257 = vmatpush.msra.mxu0 %v102_v59  ;;  %277 = vmatpush.msra.mxu1 %v103_v61 }
  0xd7   :  { %258 = vmatpush.msra.mxu0 %v81_v40  ;;  %278 = vmatpush.msra.mxu1 %v82_v3 }
  0xd8   :  { %571 = vmatmul.msk.f32.vlgmr.msra.gmra.mxu0 %vm239_vm8, %v232_v4  ;;  %572 = vmatmul.msk.f32.vlgmr.msra.gmra.mxu1 %vm239_vm8, %v232_v4 }
  0xf6   :  { %v237_v36 = vpop.permute.xlu2 %236 }
 0x148   :  { %v300_v27 = vpop.f32.mrf.mxu2 }
 0x149   :  { %v301_v33 = vadd.f32 %v300_v27, %v237_v36 }
 0x14b   :  { %v1041_v10 = vmax.f32 %v301_v33, 0.0 }
 0x152   :  { %v320_v22 = vpop.f32.mrf.mxu3 }
 0x153   :  { %v321_v4 = vadd.f32 %v320_v22, %v237_v36 }
 0x155   :  { %v260_v60 = vpop.f32.mrf.mxu0  ;;  %v280_v5 = vpop.f32.mrf.mxu1  ;;  %v326_v24 = vmax.f32 %v321_v4, 0.0 }
 0x156   :  { %v261_v7 = vadd.f32 %v260_v60, %v237_v36  ;;  %v281_v16 = vadd.f32 %v280_v5, %v237_v36 }
 0x158   :  { %v1020_v19 = vmax.f32 %v261_v7, 0.0  ;;  %v1022_v21 = vmax.f32 %v281_v16, 0.0 }
 0x15a   :  { %439 = vrot.lane.b32.xlu0 %v1020_v19, %s677_s0  ;;  %377 = vrot.lane.b32.xlu2 %v1022_v21, %s681_s11 }
 0x15b   :  { %425 = vrot.lane.b32.xlu1 %v1022_v21, %s678_s5 }
 0x162   :  { %423 = vrot.lane.b32.xlu0 %v1020_v19, %s678_s5  ;;  %409 = vrot.lane.b32.xlu2 %v1022_v21, %s679_s9 }
 0x163   :  { %345 = vrot.lane.b32.xlu1 %v1022_v21, %s683_s13 }
 0x16a   :  { %407 = vrot.lane.b32.xlu0 %v1020_v19, %s679_s9  ;;  %445 = vrot.lane.b32.xlu2 %v326_v24, %s677_s0 }
 0x16b   :  { %329 = vrot.lane.b32.xlu1 %v1022_v21, %s684_s14 }
 0x172   :  { %391 = vrot.lane.b32.xlu0 %v1020_v19, %s680_s10  ;;  %429 = vrot.lane.b32.xlu2 %v326_v24, %s678_s5 }
 0x173   :  { %443 = vrot.lane.b32.xlu1 %v1041_v10, %s677_s0 }
 0x17a   :  { %413 = vrot.lane.b32.xlu2 %v326_v24, %s679_s9  ;;  %441 = vrot.lane.b32.xlu0 %v1022_v21, %s677_s0 }
 0x17b   :  { %427 = vrot.lane.b32.xlu1 %v1041_v10, %s678_s5 }
 0x182   :  { %397 = vrot.lane.b32.xlu2 %v326_v24, %s680_s10  ;;  %361 = vrot.lane.b32.xlu0 %v1022_v21, %s682_s12 }
 0x183   :  { %411 = vrot.lane.b32.xlu1 %v1041_v10, %s679_s9 }
 0x18a   :  { %365 = vrot.lane.b32.xlu2 %v326_v24, %s682_s12  ;;  %393 = vrot.lane.b32.xlu0 %v1022_v21, %s680_s10 }
 0x18b   :  { %395 = vrot.lane.b32.xlu1 %v1041_v10, %s680_s10 }
 0x192   :  { %347 = vrot.lane.b32.xlu2 %v1041_v10, %s683_s13  ;;  %379 = vrot.lane.b32.xlu0 %v1041_v10, %s681_s11 }
 0x193   :  { %381 = vrot.lane.b32.xlu1 %v326_v24, %s681_s11 }
 0x19a   :  { %331 = vrot.lane.b32.xlu2 %v1041_v10, %s684_s14  ;;  %349 = vrot.lane.b32.xlu0 %v326_v24, %s683_s13 }
 0x19b   :  { %363 = vrot.lane.b32.xlu1 %v1041_v10, %s682_s12 }
 0x1a2   :  { %359 = vrot.lane.b32.xlu2 %v1020_v19, %s682_s12  ;;  %333 = vrot.lane.b32.xlu0 %v326_v24, %s684_s14 }
 0x1a3   :  { %375 = vrot.lane.b32.xlu1 %v1020_v19, %s681_s11 }
 0x1aa   :  { %459 = vperm.xlu2 %593, %v456_v28   ;;  %343 = vrot.lane.b32.xlu0 %v1020_v19, %s683_s13 }
 0x1ab   :  { %327 = vrot.lane.b32.xlu1 %v1020_v19, %s684_s14 }
 0x1b4   :  { %v1085_v34 = vpop.permute.xlu2 %377 }
 0x1bc   :  { %v410_v38 = vpop.permute.xlu2 %409 }
 0x1c4   :  { %v446_v12 = vpop.permute.xlu2 %445 }
 0x1cc   :  { %v440_v44 = vpop.permute.xlu0 %439  ;;  %v430_v52 = vpop.permute.xlu2 %429 }
 0x1cd   :  { %v450_v47 = vsel %vm219_vm0, %v446_v12, %v440_v44  ;;  %v426_v48 = vpop.permute.xlu1 %425 }
 0x1ce   :  { %v454_v51 = vmul.f32 %v450_v47, %v815_v14 }
 0x1d0   :  { %532 = vmatpush.msrb.mxu3 %v454_v51 }
 0x1d4   :  { %v424_v53 = vpop.permute.xlu0 %423  ;;  %v414_v3 = vpop.permute.xlu2 %413 }
 0x1d5   :  { %v434_v59 = vsel %vm198_vm1, %v430_v52, %v424_v53  ;;  %v1092_v61 = vpop.permute.xlu1 %345 }
 0x1d6   :  { %v438_v40 = vmul.f32 %v434_v59, %v821_v18 }
 0x1d8   :  { %533 = vmatpush.msrb.mxu3 %v438_v40 }
 0x1dc   :  { %v408_v36 = vpop.permute.xlu0 %407  ;;  %v398_v7 = vpop.permute.xlu2 %397 }
 0x1dd   :  { %v418_v60 = vsel %vm177_vm2, %v414_v3, %v408_v36  ;;  %v1097_v5 = vpop.permute.xlu1 %329 }
 0x1de   :  { %v422_v14 = vmul.f32 %v418_v60, %v839_v32  ;;  %v433_v32 = vsel %vm198_vm1, %v424_v53, %v426_v48  ;;  %v417_v53 = vsel %vm177_vm2, %v408_v36, %v410_v38 }
 0x1df   :  { %v435_v60 = vmul.f32 %v433_v32, %v880_v56 }
 0x1e0   :  { %534 = vmatpush.msrb.mxu3 %v422_v14 }
 0x1e4   :  { %v392_v16 = vpop.permute.xlu0 %391 }
 0x1e5   :  { %v402_v22 = vsel %vm156_vm3, %v398_v7, %v392_v16  ;;  %v444_v4 = vpop.permute.xlu1 %443 }
 0x1e6   :  { %v447_v18 = vsel %vm219_vm0, %v444_v4, %v446_v12  ;;  %v406_v27 = vmul.f32 %v402_v22, %v854_v41 }
 0x1e7   :  { %v453_v33 = vmul.f32 %v447_v18, %v823_v20 }
 0x1e8   :  { %535 = vmatpush.msrb.mxu3 %v406_v27 }
 0x1e9   :  { %512 = vmatpush.msrb.mxu2 %v453_v33 }
 0x1ea   :  { %536 = vmatpush.msrb.mxu3 %v326_v24 }
 0x1ec   :  { %v442_v28 = vpop.permute.xlu0 %441 }
 0x1ed   :  { %v428_v47 = vpop.permute.xlu1 %427  ;;  %v448_v51 = vsel %vm219_vm0, %v442_v28, %v444_v4  ;;  %v449_v59 = vsel %vm219_vm0, %v440_v44, %v442_v28 }
 0x1ee   :  { %v431_v12 = vsel %vm198_vm1, %v428_v47, %v430_v52  ;;  %v432_v20 = vsel %vm198_vm1, %v426_v48, %v428_v47  ;;  %v451_v41 = vmul.f32 %v449_v59, %v868_v49  ;;  %v452_v24 = vmul.f32 %v448_v51, %v870_v50  ;;  %v366_v52 = vpop.permute.xlu2 %365 }
 0x1ef   :  { %v437_v40 = vmul.f32 %v431_v12, %v831_v26  ;;  %v436_v44 = vmul.f32 %v432_v20, %v882_v57  ;;  %v419_v48 = vmul.f32 %v417_v53, %v890_v62 }
 0x1f0   :  { %472 = vmatpush.msrb.mxu0 %v451_v41  ;;  %492 = vmatpush.msrb.mxu1 %v452_v24 }
 0x1f1   :  { %513 = vmatpush.msrb.mxu2 %v437_v40 }
 0x1f2   :  { %473 = vmatpush.msrb.mxu0 %v435_v60  ;;  %493 = vmatpush.msrb.mxu1 %v436_v44 }
 0x1f4   :  { %474 = vmatpush.msrb.mxu0 %v419_v48  ;;  %v362_v49 = vpop.permute.xlu0 %361 }
 0x1f5   :  { %v412_v50 = vpop.permute.xlu1 %411 }
 0x1f6   :  { %v415_v36 = vsel %vm177_vm2, %v412_v50, %v414_v3  ;;  %v416_v26 = vsel %vm177_vm2, %v410_v38, %v412_v50  ;;  %v348_v4 = vpop.permute.xlu2 %347 }
 0x1f7   :  { %v420_v14 = vmul.f32 %v416_v26, %v892_v63  ;;  %v421_v56 = vmul.f32 %v415_v36, %v837_v30 }
 0x1f9   :  { %494 = vmatpush.msrb.mxu1 %v420_v14  ;;  %514 = vmatpush.msrb.mxu2 %v421_v56 }
 0x1fc   :  { %v394_v57 = vpop.permute.xlu0 %393 }
 0x1fd   :  { %v396_v22 = vpop.permute.xlu1 %395  ;;  %v401_v62 = vsel %vm156_vm3, %v392_v16, %v394_v57 }
 0x1fe   :  { %v399_v18 = vsel %vm156_vm3, %v396_v22, %v398_v7  ;;  %v400_v3 = vsel %vm156_vm3, %v394_v57, %v396_v22  ;;  %v403_v38 = vmul.f32 %v401_v62, %v932_v37  ;;  %v332_v33 = vpop.permute.xlu2 %331 }
 0x1ff   :  { %v404_v63 = vmul.f32 %v400_v3, %v934_v42  ;;  %v405_v30 = vmul.f32 %v399_v18, %v850_v39  ;;  %v336_v51 = vsel %vm72_vm7, %v1097_v5, %v332_v33 }
 0x200   :  { %475 = vmatpush.msrb.mxu0 %v403_v38  ;;  %v341_v41 = vmul.f32 %v336_v51, %v952_v58 }
 0x201   :  { %495 = vmatpush.msrb.mxu1 %v404_v63  ;;  %515 = vmatpush.msrb.mxu2 %v405_v30 }
 0x202   :  { %476 = vmatpush.msrb.mxu0 %v1020_v19 }
 0x203   :  { %496 = vmatpush.msrb.mxu1 %v1022_v21  ;;  %516 = vmatpush.msrb.mxu2 %v1041_v10  ;;  %v352_v10 = vsel %vm93_vm6, %v1092_v61, %v348_v4 }
 0x204   :  { %v380_v16 = vpop.permute.xlu0 %379  ;;  %v357_v59 = vmul.f32 %v352_v10, %v928_v35 }
 0x205   :  { %v382_v7 = vpop.permute.xlu1 %381  ;;  %v384_v27 = vsel %vm135_vm4, %v1085_v34, %v380_v16 }
 0x206   :  { %v383_v37 = vsel %vm135_vm4, %v380_v16, %v382_v7  ;;  %v389_v39 = vmul.f32 %v384_v27, %v903_v13  ;;  %v360_v20 = vpop.permute.xlu2 %359 }
 0x207   :  { %v390_v42 = vmul.f32 %v383_v37, %v905_v15  ;;  %v369_v24 = vsel %vm114_vm5, %v360_v20, %v362_v49 }
 0x208   :  { %517 = vmatpush.msrb.mxu2 %v389_v39 }
 0x209   :  { %537 = vmatpush.msrb.mxu3 %v390_v42 }
 0x20c   :  { %v350_v19 = vpop.permute.xlu0 %349 }
 0x20d   :  { %v364_v21 = vpop.permute.xlu1 %363  ;;  %v351_v13 = vsel %vm93_vm6, %v348_v4, %v350_v19 }
 0x20e   :  { %v367_v28 = vsel %vm114_vm5, %v364_v21, %v366_v52  ;;  %v368_v32 = vsel %vm114_vm5, %v362_v49, %v364_v21  ;;  %v358_v12 = vmul.f32 %v351_v13, %v956_v43  ;;  %v370_v43 = vsel %vm114_vm5, %v366_v52, %v360_v20 }
 0x20f   :  { %v373_v15 = vmul.f32 %v368_v32, %v918_v25  ;;  %v374_v47 = vmul.f32 %v367_v28, %v916_v23  ;;  %v455_v25 = vld [vmem:[%s1213_s3] sm:$0xff]  ;;  %v371_v52 = vmul.f32 %v370_v43, %v985_v29  ;;  %v372_v49 = vmul.f32 %v369_v24, %v987_v31  ;;  %s686_s3 = smov [#allocation7]  }
 0x210   :  { %s558_s20 = sshll.u32 %s686_s3, 4  ;;  %s559_s20 = int_to_ptr.vmem [resolvable:$true] %s558_s20 }
 0x211   :  { %518 = vmatpush.msrb.mxu2 %v373_v15  ;;  %538 = vmatpush.msrb.mxu3 %v374_v47 }
 0x213   :  { %519 = vmatpush.msrb.mxu2 %v357_v59  ;;  %539 = vmatpush.msrb.mxu3 %v358_v12 }
 0x214   :  { %v334_v23 = vpop.permute.xlu0 %333 }
 0x215   :  { %v376_v53 = vpop.permute.xlu1 %375  ;;  %520 = vmatpush.msrb.mxu2 %v341_v41  ;;  %v335_v35 = vsel %vm72_vm7, %v332_v33, %v334_v23 }
 0x216   :  { %v385_v58 = vsel %vm135_vm4, %v376_v53, %v1085_v34  ;;  %v386_v40 = vsel %vm135_vm4, %v382_v7, %v376_v53  ;;  %577 = vmatmul.msk.f32.vlgmr.msrb.gmra.mxu2 %vm239_vm8, %v455_v25  ;;  %v342_v60 = vmul.f32 %v335_v35, %v972_v17 }
 0x217   :  { %v387_v44 = vmul.f32 %v386_v40, %v968_v8  ;;  %v388_v48 = vmul.f32 %v385_v58, %v970_v9 }
 0x218   :  { %540 = vmatpush.msrb.mxu3 %v342_v60 }
 0x219   :  { %477 = vmatpush.msrb.mxu0 %v387_v44  ;;  %497 = vmatpush.msrb.mxu1 %v388_v48 }
 0x21a   :  { %578 = vmatmul.msk.f32.vlgmr.msrb.gmra.mxu3 %vm239_vm8, %v455_v25 }
 0x21b   :  { %478 = vmatpush.msrb.mxu0 %v371_v52  ;;  %498 = vmatpush.msrb.mxu1 %v372_v49 }
 0x21c   :  { %v344_v34 = vpop.permute.xlu0 %343 }
 0x21d   :  { %v328_v50 = vpop.permute.xlu1 %327  ;;  %v353_v17 = vsel %vm93_vm6, %v344_v34, %v1092_v61  ;;  %v354_v8 = vsel %vm93_vm6, %v350_v19, %v344_v34 }
 0x21e   :  { %v337_v9 = vsel %vm72_vm7, %v328_v50, %v1097_v5  ;;  %v338_v29 = vsel %vm72_vm7, %v334_v23, %v328_v50  ;;  %v355_v31 = vmul.f32 %v354_v8, %v997_v45  ;;  %v356_v36 = vmul.f32 %v353_v17, %v999_v46  ;;  %v460_v5 = vpop.permute.xlu2 %459 }
 0x21f   :  { %v339_v26 = vmul.f32 %v338_v29, %v1010_v54  ;;  %v340_v61 = vmul.f32 %v337_v9, %v1012_v55 }
 0x220   :  { %479 = vmatpush.msrb.mxu0 %v355_v31  ;;  %499 = vmatpush.msrb.mxu1 %v356_v36 }
 0x222   :  { %480 = vmatpush.msrb.mxu0 %v339_v26  ;;  %500 = vmatpush.msrb.mxu1 %v340_v61 }
 0x223   :  { %575 = vmatmul.msk.f32.vlgmr.msrb.gmra.mxu0 %vm239_vm8, %v455_v25  ;;  %576 = vmatmul.msk.f32.vlgmr.msrb.gmra.mxu1 %vm239_vm8, %v455_v25 }
 0x299   :  { %v522_v14 = vpop.f32.mrf.mxu2 }
 0x29a   :  { %v523_v11 = vadd.f32 %v522_v14, %v460_v5 }
 0x29c   :  { %v547_v56 = vadd.f32 %v523_v11, %v730_v1 }
 0x29d   :  { %v542_v45 = vpop.f32.mrf.mxu3 }
 0x29e   :  { %551 = vst [vmem:[#allocation7 + $0x10] sm:$0xff] %v547_v56  ;;  %v543_v46 = vadd.f32 %v542_v45, %v460_v5 }
 0x2a0   :  { %v548_v57 = vadd.f32 %v543_v46, %v728_v0  ;;  %v482_v22 = vpop.f32.mrf.mxu0  ;;  %v502_v54 = vpop.f32.mrf.mxu1 }
 0x2a1   :  { %v483_v62 = vadd.f32 %v482_v22, %v460_v5  ;;  %v503_v55 = vadd.f32 %v502_v54, %v460_v5 }
 0x2a2   :  { %552 = vst [vmem:[#allocation7 + $0x18] sm:$0xff] %v548_v57 }
 0x2a3   :  { %v545_v4 = vadd.f32 %v483_v62, %v732_v2  ;;  %v546_v1 = vadd.f32 %v503_v55, %v767_v6 }
 0x2a5   :  { %549 = vst [vmem:[#allocation7] sm:$0xff] %v545_v4 }
 0x2a6   :  { %550 = vst [vmem:[#allocation7 + $0x8] sm:$0xff] %v546_v1 }
 0x2a7   :  { %563 = dma.vmem_to_hbm [thread:$0]  %s559_s20, 512, %s561_s23, [#allocation4]  }
 0x2a8   :  { %671 = dma.done.wait [#allocation4], 512  }
 0x2a9   :  { %672 = vsyncadd [#allocation4], 4294966784 }
 0x2aa   :  { %568 = vsyncpa [#allocation3], 1 }
 0x2ab   :  { %569 = vsyncpa [#allocation6], 1 }
 0x2ac   :  { %570 = vsyncpa [#allocation4], 1 }

</bundles_post_ra>
